<compile_context>
chip_gen: v5e
topology: v5e:2x2
jax: 0.10.0
libtpu: 0.0.40
codegen_flags: <defaults>
</compile_context>

<pallas_src>
from functools import partial

import jax
import jax.numpy as jnp
from jax.experimental import pallas as pl
from jax.experimental.pallas import tpu as pltpu


def _mapping_kernel(z_ref, w1_ref, b1_ref, w2_ref, b2_ref, out_ref):
    # Weights arrive already in the compute dtype (bf16 or f32); only the
    # streamed activation tile may need a cast.
    compute_dt = w1_ref.dtype

    # Layer 1: Linear + LeakyReLU(0.2). MXU matmul, f32 accumulation.
    z = z_ref[...].astype(compute_dt)
    h = jnp.dot(z, w1_ref[...], preferred_element_type=jnp.float32)
    h = h + b1_ref[...]
    h = jnp.maximum(h, 0.2 * h)          # LeakyReLU as a single vmax

    # Layer 2: Linear + LeakyReLU(0.2).
    o = jnp.dot(h.astype(compute_dt), w2_ref[...],
                preferred_element_type=jnp.float32)
    o = o + b2_ref[...]
    o = jnp.maximum(o, 0.2 * o)

    out_ref[...] = o.astype(out_ref.dtype)


def _round_up(x, m):
    return ((x + m - 1) // m) * m


def _choose_block_b(B):
    """MXU-friendly batch tile.

    * B < 512: a single grid step whose tile is the batch rounded up to a
      multiple of 128 (>= MXU height; no split on single-TC v5e/v6e, and a
      2-way split would leave each v7x MXU mostly idle anyway).
    * B >= 512: at least two grid steps so the "parallel" axis can be sharded
      across v7x's two TensorCores, with each step getting >= 256 rows.
    * Capped at 1024 rows so double-buffered z/out tiles comfortably fit the
      default scoped-VMEM limit on every generation (incl. v5e's 16 MiB).
    """
    if B < 512:
        return _round_up(B, 128)
    half = _round_up(pl.cdiv(B, 2), 256)
    return min(1024, half)


def mapping_network(z, w1, b1, w2, b2, *, block_b=None, use_bf16=True,
                    out_dtype=None, precision=None):
    """Fused 2-layer mapping network.

    z: (B, z_dim). w1: (z_dim, w_dim), b1: (1, w_dim), w2: (w_dim, w_dim),
    b2: (1, w_dim)  (weights already transposed to (in, out)).
    Returns (B, w_dim) in `out_dtype` (default: z.dtype).

    use_bf16=True (default) runs the matmuls on the bf16 MXU path with f32
    accumulation; use_bf16=False keeps plain-f32 operands. For strict f32
    accuracy pass precision=jax.lax.Precision.HIGHEST with use_bf16=False.
    """
    B, z_dim = z.shape
    w_dim = w1.shape[1]
    if out_dtype is None:
        out_dtype = z.dtype

    # Pre-cast resident weights once in the wrapper (cacheable under jit, and
    # ideally the caller stores params in bf16 directly); biases stay f32 so
    # the bias-add happens on the f32 accumulator.
    compute_dt = jnp.bfloat16 if use_bf16 else jnp.float32
    w1c = w1.astype(compute_dt)
    w2c = w2.astype(compute_dt)
    b1c = b1.astype(jnp.float32)
    b2c = b2.astype(jnp.float32)

    if block_b is None:
        block_b = _choose_block_b(B)
    grid = (pl.cdiv(B, block_b),)   # ragged last block handled by Pallas

    isz = lambda a: a.dtype.itemsize
    cost = pl.CostEstimate(
        flops=2 * B * w_dim * (z_dim + w_dim),
        transcendentals=0,
        bytes_accessed=(z.size * isz(z)
                        + w1c.size * isz(w1c) + b1c.size * isz(b1c)
                        + w2c.size * isz(w2c) + b2c.size * isz(b2c)
                        + B * w_dim * jnp.dtype(out_dtype).itemsize),
    )

    kernel = _mapping_kernel
    if precision is not None:
        # Optional strict-precision path (f32 only); wraps jnp.dot precision.
        def kernel(z_ref, w1_ref, b1_ref, w2_ref, b2_ref, out_ref):
            h = jnp.dot(z_ref[...], w1_ref[...],
                        preferred_element_type=jnp.float32, precision=precision)
            h = h + b1_ref[...]
            h = jnp.maximum(h, 0.2 * h)
            o = jnp.dot(h.astype(w2_ref.dtype), w2_ref[...],
                        preferred_element_type=jnp.float32, precision=precision)
            o = o + b2_ref[...]
            o = jnp.maximum(o, 0.2 * o)
            out_ref[...] = o.astype(out_ref.dtype)

    out = pl.pallas_call(
        kernel,
        out_shape=jax.ShapeDtypeStruct((B, w_dim), out_dtype),
        grid_spec=pltpu.PrefetchScalarGridSpec(
            num_scalar_prefetch=0,
            grid=grid,
            in_specs=[
                pl.BlockSpec((block_b, z_dim), lambda i: (i, 0)),   # z tile (streamed)
                pl.BlockSpec((z_dim, w_dim), lambda i: (0, 0)),     # W1 (resident)
                pl.BlockSpec((1, w_dim), lambda i: (0, 0)),         # b1 (resident)
                pl.BlockSpec((w_dim, w_dim), lambda i: (0, 0)),     # W2 (resident)
                pl.BlockSpec((1, w_dim), lambda i: (0, 0)),         # b2 (resident)
            ],
            out_specs=pl.BlockSpec((block_b, w_dim), lambda i: (i, 0)),
        ),
        compiler_params=pltpu.CompilerParams(
            dimension_semantics=("parallel",),
        ),
        cost_estimate=cost,
    )(z, w1c, b1c, w2c, b2c)

    return out


def _reference(z, w1, b1, w2, b2):
    h = z @ w1 + b1
    h = jnp.where(h >= 0.0, h, 0.2 * h)
    o = h @ w2 + b2
    return jnp.where(o >= 0.0, o, 0.2 * o)


if __name__ == "__main__":
    # Small shapes consistent with the module defaults (z_dim = w_dim = 256).
    B, z_dim, w_dim = 64, 256, 256

    key = jax.random.PRNGKey(0)
    kz, k1, kb1, k2, kb2 = jax.random.split(key, 5)

    z = jax.random.normal(kz, (B, z_dim), dtype=jnp.float32)

    # Deterministic parameter init (nn.Linear-like uniform bounds), stored as
    # (in, out) — i.e. already transposed relative to PyTorch's (out, in).
    bound1 = 1.0 / jnp.sqrt(z_dim)
    w1 = jax.random.uniform(k1, (z_dim, w_dim), jnp.float32, -bound1, bound1)
    b1 = jax.random.uniform(kb1, (1, w_dim), jnp.float32, -bound1, bound1)
    bound2 = 1.0 / jnp.sqrt(w_dim)
    w2 = jax.random.uniform(k2, (w_dim, w_dim), jnp.float32, -bound2, bound2)
    b2 = jax.random.uniform(kb2, (1, w_dim), jnp.float32, -bound2, bound2)

    ref = _reference(z, w1, b1, w2, b2)

    # Default (production) path: bf16 MXU matmuls, f32 accumulate/activations.
    out_bf16 = jax.block_until_ready(mapping_network(z, w1, b1, w2, b2))
    assert out_bf16.shape == (B, w_dim)
    assert jnp.allclose(out_bf16, ref, atol=5e-2, rtol=5e-2), "bf16 path mismatch"

    # f32 operand path (default matmul precision, same as the jnp reference).
    out_f32 = jax.block_until_ready(
        mapping_network(z, w1, b1, w2, b2, use_bf16=False))
    assert jnp.allclose(out_f32, ref, atol=1e-4, rtol=1e-4), "f32 path mismatch"

    # Non-tile-aligned batch exercises the ragged last block (no pad/slice).
    zr = z[:37]
    out_ragged = jax.block_until_ready(
        mapping_network(zr, w1, b1, w2, b2, use_bf16=False))
    assert out_ragged.shape == (37, w_dim)
    assert jnp.allclose(out_ragged, ref[:37], atol=1e-4, rtol=1e-4), \
        "ragged-batch mismatch"

    print("KERNEL_OK")
</pallas_src>

<mosaic_0001>
module attributes {stable_mosaic.version = 11 : i64} {
  func.func @_mapping_kernel(%arg0: i32, %arg1: memref<128x256xf32, #tpu.memory_space<vmem>>, %arg2: memref<256x256xbf16, #tpu.memory_space<vmem>>, %arg3: memref<1x256xf32, #tpu.memory_space<vmem>>, %arg4: memref<256x256xbf16, #tpu.memory_space<vmem>>, %arg5: memref<1x256xf32, #tpu.memory_space<vmem>>, %arg6: memref<128x256xf32, #tpu.memory_space<vmem>>) attributes {dimension_semantics = [#tpu.dimension_semantics<parallel>], iteration_bounds = array<i64: 1>, scalar_prefetch = 0 : i64, scratch_operands = 0 : i64, tpu.core_type = #tpu.core_type<tc>, window_params = [{transform_indices = @transform_0, window_bounds = array<i64: 128, 256>}, {pipeline_mode = #tpu.pipeline_mode<synchronous>, transform_indices = @transform_1, window_bounds = array<i64: 256, 256>}, {pipeline_mode = #tpu.pipeline_mode<synchronous>, transform_indices = @transform_2, window_bounds = array<i64: 1, 256>}, {pipeline_mode = #tpu.pipeline_mode<synchronous>, transform_indices = @transform_3, window_bounds = array<i64: 256, 256>}, {pipeline_mode = #tpu.pipeline_mode<synchronous>, transform_indices = @transform_4, window_bounds = array<i64: 1, 256>}, {transform_indices = @transform_5, window_bounds = array<i64: 128, 256>}]} {
    %c0 = arith.constant 0 : index
    %c0_0 = arith.constant 0 : index
    %0 = vector.load %arg1[%c0, %c0_0] : memref<128x256xf32, #tpu.memory_space<vmem>>, vector<128x256xf32>
    %1 = arith.truncf %0 : vector<128x256xf32> to vector<128x256xbf16>
    %c0_1 = arith.constant 0 : index
    %c0_2 = arith.constant 0 : index
    %2 = vector.load %arg2[%c0_1, %c0_2] : memref<256x256xbf16, #tpu.memory_space<vmem>>, vector<256x256xbf16>
    %cst = arith.constant dense<0.000000e+00> : vector<128x256xf32>
    %3 = tpu.matmul %1, %2, %cst {dimension_numbers = #tpu.dot_dimension_numbers<[1], [0], [0], [1], [0, 0, 1, 1], [], []>} : vector<128x256xbf16>, vector<256x256xbf16>, vector<128x256xf32> -> vector<128x256xf32>
    %c0_3 = arith.constant 0 : index
    %c0_4 = arith.constant 0 : index
    %4 = vector.load %arg3[%c0_3, %c0_4] : memref<1x256xf32, #tpu.memory_space<vmem>>, vector<1x256xf32>
    %5 = vector.broadcast %4 : vector<1x256xf32> to vector<128x256xf32>
    %6 = arith.addf %3, %5 : vector<128x256xf32>
    %cst_5 = arith.constant 2.000000e-01 : f32
    %7 = vector.broadcast %cst_5 : f32 to vector<128x256xf32>
    %8 = arith.mulf %7, %6 : vector<128x256xf32>
    %9 = arith.maximumf %6, %8 : vector<128x256xf32>
    %10 = arith.truncf %9 : vector<128x256xf32> to vector<128x256xbf16>
    %c0_6 = arith.constant 0 : index
    %c0_7 = arith.constant 0 : index
    %11 = vector.load %arg4[%c0_6, %c0_7] : memref<256x256xbf16, #tpu.memory_space<vmem>>, vector<256x256xbf16>
    %cst_8 = arith.constant dense<0.000000e+00> : vector<128x256xf32>
    %12 = tpu.matmul %10, %11, %cst_8 {dimension_numbers = #tpu.dot_dimension_numbers<[1], [0], [0], [1], [0, 0, 1, 1], [], []>} : vector<128x256xbf16>, vector<256x256xbf16>, vector<128x256xf32> -> vector<128x256xf32>
    %c0_9 = arith.constant 0 : index
    %c0_10 = arith.constant 0 : index
    %13 = vector.load %arg5[%c0_9, %c0_10] : memref<1x256xf32, #tpu.memory_space<vmem>>, vector<1x256xf32>
    %14 = vector.broadcast %13 : vector<1x256xf32> to vector<128x256xf32>
    %15 = arith.addf %12, %14 : vector<128x256xf32>
    %cst_11 = arith.constant 2.000000e-01 : f32
    %16 = vector.broadcast %cst_11 : f32 to vector<128x256xf32>
    %17 = arith.mulf %16, %15 : vector<128x256xf32>
    %18 = arith.maximumf %15, %17 : vector<128x256xf32>
    %c0_12 = arith.constant 0 : index
    %c0_13 = arith.constant 0 : index
    %19 = vector.load %arg6[%c0_12, %c0_13] : memref<128x256xf32, #tpu.memory_space<vmem>>, vector<128x256xf32>
    tpu.vector_store %arg6[%c0_12, %c0_13], %18 {strides = array<i32>} : memref<128x256xf32, #tpu.memory_space<vmem>>, vector<128x256xf32>,
    return
  }
  func.func @transform_0(%arg0: i32) -> (i32, i32) {
    %c0_i32 = arith.constant 0 : i32
    %c0_i32_0 = arith.constant 0 : i32
    return %arg0, %c0_i32 : i32, i32
  }
  func.func @transform_1(%arg0: i32) -> (i32, i32) {
    %c0_i32 = arith.constant 0 : i32
    %c0_i32_0 = arith.constant 0 : i32
    %c0_i32_1 = arith.constant 0 : i32
    return %c0_i32, %c0_i32_0 : i32, i32
  }
  func.func @transform_2(%arg0: i32) -> (i32, i32) {
    %c0_i32 = arith.constant 0 : i32
    %c0_i32_0 = arith.constant 0 : i32
    %c0_i32_1 = arith.constant 0 : i32
    return %c0_i32, %c0_i32_0 : i32, i32
  }
  func.func @transform_3(%arg0: i32) -> (i32, i32) {
    %c0_i32 = arith.constant 0 : i32
    %c0_i32_0 = arith.constant 0 : i32
    %c0_i32_1 = arith.constant 0 : i32
    return %c0_i32, %c0_i32_0 : i32, i32
  }
  func.func @transform_4(%arg0: i32) -> (i32, i32) {
    %c0_i32 = arith.constant 0 : i32
    %c0_i32_0 = arith.constant 0 : i32
    %c0_i32_1 = arith.constant 0 : i32
    return %c0_i32, %c0_i32_0 : i32, i32
  }
  func.func @transform_5(%arg0: i32) -> (i32, i32) {
    %c0_i32 = arith.constant 0 : i32
    %c0_i32_0 = arith.constant 0 : i32
    return %arg0, %c0_i32 : i32, i32
  }
}

</mosaic_0001>

<bundles_post_ra>
// kernel: tpu_custom_call.1
= control target key start
LH: loop header
LB: loop body
LE: loop exit
PB: predicated region body
PF: predicated region fallthrough
CT: control target
= control target key end

     0   :  { %10 = vsyncpa [#allocation3], 0  ;;  %s1707_s0 = inlined_call_operand.hbm [shape: f32[64,256], index: 0, kind: input, shape index: {}]   ;;  %s1708_s1 = inlined_call_operand.hbm [shape: bf16[256,256], index: 1, kind: input, shape index: {}]   ;;  %s1709_s2 = inlined_call_operand.hbm [shape: f32[1,256], index: 2, kind: input, shape index: {}]   ;;  %s1710_s3 = inlined_call_operand.hbm [shape: bf16[256,256], index: 3, kind: input, shape index: {}]   ;;  %s1711_s4 = inlined_call_operand.vmem [shape: f32[1,256], index: 4, kind: input, shape index: {}]   ;;  %s1712_s5 = inlined_call_operand.hbm [shape: f32[64,256], index: 5, kind: output, shape index: {}]  }
   0x1   :  { %11 = vsyncpa [#allocation6], 0 }
   0x2   :  { %12 = vsyncpa [#allocation9], 0 }
   0x3   :  { %13 = vsyncpa [#allocation4], 0  ;;  %s31_s20 = sshll.u32 %s1708_s1, 4  ;;  %s32_s20 = int_to_ptr.hbm [resolvable:$true] %s31_s20 }
   0x4   :  { %17 = vsyncadd [#allocation3], 2048  ;;  %s1572_s21 = smov [#allocation5]   ;;  %s18_s25 = sshll.u32 %s1707_s0, 4  ;;  %s19_s25 = int_to_ptr.hbm [resolvable:$true] %s18_s25 }
   0x5   :  { %s33_s22 = sshll.u32 %s1572_s21, 4  ;;  %s1573_s26 = smov 128   ;;  %s34_s22 = int_to_ptr.vmem [resolvable:$true] %s33_s22 }
   0x6   :  { %s1574_s27 = smov 8   ;;  %s1575_s28 = smov [#allocation2]  }
   0x7   :  { %39 = dma.hbm_to_vmem [thread:$0]  %s32_s20, 4096, %s34_s22, [#allocation6], %s1573_s26, %s1573_s26, %s1574_s27  }
   0x8   :  { %s20_s29 = sshll.u32 %s1575_s28, 4  ;;  %s1576_s30 = smov 256   ;;  %s21_s29 = int_to_ptr.vmem [resolvable:$true] %s20_s29 }
   0x9   :  { %s1577_s6 = smov 16   ;;  %s45_s8 = sshll.u32 %s1709_s2, 4  ;;  %s46_s8 = int_to_ptr.hbm [resolvable:$true] %s45_s8 }
   0xa   :  { %26 = dma.hbm_to_vmem [thread:$0]  %s19_s25, 2048, %s21_s29, [#allocation3], %s1576_s30, %s1576_s30, %s1577_s6  }
   0xb   :  { %s1578_s9 = smov [#allocation7]   ;;  %s55_s12 = sshll.u32 %s1710_s3, 4  ;;  %s56_s12 = int_to_ptr.hbm [resolvable:$true] %s55_s12 }
   0xc   :  { %s47_s0 = sshll.u32 %s1578_s9, 4  ;;  %s1579_s13 = smov [#allocation8]   ;;  %s48_s0 = int_to_ptr.vmem [resolvable:$true] %s47_s0 }
   0xd   :  { %50 = dma.hbm_to_vmem [thread:$0]  %s46_s8, 32, %s48_s0, [#allocation6]  }
   0xe   :  { %s57_s14 = sshll.u32 %s1579_s13, 4  ;;  %s58_s14 = int_to_ptr.vmem [resolvable:$true] %s57_s14 }
   0xf   :  { %63 = dma.hbm_to_vmem [thread:$0]  %s56_s12, 4096, %s58_s14, [#allocation9], %s1573_s26, %s1573_s26, %s1574_s27  }
  0x10   :  { %1564 = dma.done.wait [#allocation3], 4096  }
  0x11   :  { %1565 = vsyncadd [#allocation3], 4294963200 }
  0x12   :  { %1566 = dma.done.wait [#allocation6], 4128  }
  0x13   :  { %1567 = vsyncadd [#allocation6], 4294963168 }
  0x14   :  { %1568 = dma.done.wait [#allocation9], 4096  }
  0x15   :  { %1569 = vsyncadd [#allocation9], 4294963200  ;;  %v1173_v0 = vld [vmem:[#allocation5 + $0x70] sm:$0xf]  ;;  %v1386_v1 = vld [vmem:[#allocation5 + $0x74] sm:$0xf0] }
  0x16   :  { %v1237_v2 = vld [vmem:[#allocation5 + $0xf0] sm:$0xf]  ;;  %v1174_v3 = vor.u32 %v1386_v1, %v1173_v0  ;;  %v1402_v4 = vld [vmem:[#allocation5 + $0xf4] sm:$0xf0]  ;;  %v1385_v5 = vld [vmem:[#allocation5 + $0x74] sm:$0xf] }
  0x17   :  { %v1175_v6 = vld [vmem:[#allocation5 + $0x78] sm:$0xf0]  ;;  %v1238_v7 = vor.u32 %v1402_v4, %v1237_v2  ;;  %v1401_v9 = vld [vmem:[#allocation5 + $0xf4] sm:$0xf]  ;;  %v1165_v11 = vld [vmem:[#allocation5 + $0x60] sm:$0xf] }
  0x18   :  { %v1178_v8 = vor.u32 %v1385_v5, %v1175_v6  ;;  %v1239_v10 = vld [vmem:[#allocation5 + $0xf8] sm:$0xf0]  ;;  %328 = vmatpush.bf16.msra.mxu0 %v1174_v3  ;;  %v1384_v13 = vld [vmem:[#allocation5 + $0x64] sm:$0xf0]  ;;  %v1229_v14 = vld [vmem:[#allocation5 + $0xe0] sm:$0xf] }
  0x19   :  { %v1242_v12 = vor.u32 %v1401_v9, %v1239_v10  ;;  %v1400_v15 = vld [vmem:[#allocation5 + $0xe4] sm:$0xf0]  ;;  %377 = vmatpush.bf16.msra.mxu1 %v1238_v7  ;;  %v1166_v16 = vor.u32 %v1384_v13, %v1165_v11  ;;  %v1383_v18 = vld [vmem:[#allocation5 + $0x64] sm:$0xf]  ;;  %v1167_v19 = vld [vmem:[#allocation5 + $0x68] sm:$0xf0] }
  0x1a   :  { %426 = vmatpush.bf16.msra.mxu2 %v1178_v8  ;;  %v1230_v17 = vor.u32 %v1400_v15, %v1229_v14  ;;  %v1399_v20 = vld [vmem:[#allocation5 + $0xe4] sm:$0xf]  ;;  %v1170_v21 = vor.u32 %v1383_v18, %v1167_v19  ;;  %v1231_v22 = vld [vmem:[#allocation5 + $0xe8] sm:$0xf0]  ;;  %v1157_v23 = vld [vmem:[#allocation5 + $0x50] sm:$0xf] }
  0x1b   :  { %475 = vmatpush.bf16.msra.mxu3 %v1242_v12  ;;  %v1382_v24 = vld [vmem:[#allocation5 + $0x54] sm:$0xf0]  ;;  %v1234_v25 = vor.u32 %v1399_v20, %v1231_v22  ;;  %v1221_v26 = vld [vmem:[#allocation5 + $0xd0] sm:$0xf]  ;;  %v1381_v28 = vld [vmem:[#allocation5 + $0x54] sm:$0xf] }
  0x1c   :  { %v1398_v27 = vld [vmem:[#allocation5 + $0xd4] sm:$0xf0]  ;;  %329 = vmatpush.bf16.msra.mxu0 %v1166_v16  ;;  %v1158_v29 = vor.u32 %v1382_v24, %v1157_v23  ;;  %v1159_v30 = vld [vmem:[#allocation5 + $0x58] sm:$0xf0]  ;;  %v1397_v31 = vld [vmem:[#allocation5 + $0xd4] sm:$0xf] }
  0x1d   :  { %v1223_v32 = vld [vmem:[#allocation5 + $0xd8] sm:$0xf0]  ;;  %378 = vmatpush.bf16.msra.mxu1 %v1230_v17  ;;  %v1222_v33 = vor.u32 %v1398_v27, %v1221_v26  ;;  %v1162_v34 = vor.u32 %v1381_v28, %v1159_v30  ;;  %v1149_v35 = vld [vmem:[#allocation5 + $0x40] sm:$0xf]  ;;  %v1380_v36 = vld [vmem:[#allocation5 + $0x44] sm:$0xf0] }
  0x1e   :  { %427 = vmatpush.bf16.msra.mxu2 %v1170_v21  ;;  %v1213_v37 = vld [vmem:[#allocation5 + $0xc0] sm:$0xf]  ;;  %v1226_v38 = vor.u32 %v1397_v31, %v1223_v32  ;;  %v1396_v39 = vld [vmem:[#allocation5 + $0xc4] sm:$0xf0]  ;;  %v1379_v40 = vld [vmem:[#allocation5 + $0x44] sm:$0xf]  ;;  %v1150_v44 = vor.u32 %v1380_v36, %v1149_v35 }
  0x1f   :  { %476 = vmatpush.bf16.msra.mxu3 %v1234_v25  ;;  %v1151_v41 = vld [vmem:[#allocation5 + $0x48] sm:$0xf0]  ;;  %v1395_v42 = vld [vmem:[#allocation5 + $0xc4] sm:$0xf]  ;;  %v1214_v45 = vor.u32 %v1396_v39, %v1213_v37  ;;  %v1141_v47 = vld [vmem:[#allocation5 + $0x30] sm:$0xf] }
  0x20   :  { %v1215_v43 = vld [vmem:[#allocation5 + $0xc8] sm:$0xf0]  ;;  %330 = vmatpush.bf16.msra.mxu0 %v1158_v29  ;;  %v1154_v46 = vor.u32 %v1379_v40, %v1151_v41  ;;  %v1378_v48 = vld [vmem:[#allocation5 + $0x34] sm:$0xf0]  ;;  %v1205_v49 = vld [vmem:[#allocation5 + $0xb0] sm:$0xf] }
  0x21   :  { %379 = vmatpush.bf16.msra.mxu1 %v1222_v33  ;;  %v1218_v50 = vor.u32 %v1395_v42, %v1215_v43  ;;  %v1394_v51 = vld [vmem:[#allocation5 + $0xb4] sm:$0xf0]  ;;  %v1377_v52 = vld [vmem:[#allocation5 + $0x34] sm:$0xf]  ;;  %v1143_v53 = vld [vmem:[#allocation5 + $0x38] sm:$0xf0]  ;;  %v1142_v56 = vor.u32 %v1378_v48, %v1141_v47 }
  0x22   :  { %428 = vmatpush.bf16.msra.mxu2 %v1162_v34  ;;  %v1393_v54 = vld [vmem:[#allocation5 + $0xb4] sm:$0xf]  ;;  %v1207_v55 = vld [vmem:[#allocation5 + $0xb8] sm:$0xf0]  ;;  %v1206_v57 = vor.u32 %v1394_v51, %v1205_v49  ;;  %v1146_v58 = vor.u32 %v1377_v52, %v1143_v53  ;;  %v1133_v59 = vld [vmem:[#allocation5 + $0x20] sm:$0xf] }
  0x23   :  { %477 = vmatpush.bf16.msra.mxu3 %v1226_v38  ;;  %v1376_v60 = vld [vmem:[#allocation5 + $0x24] sm:$0xf0]  ;;  %v1197_v61 = vld [vmem:[#allocation5 + $0xa0] sm:$0xf]  ;;  %v1210_v62 = vor.u32 %v1393_v54, %v1207_v55  ;;  %v1375_v0 = vld [vmem:[#allocation5 + $0x24] sm:$0xf] }
  0x24   :  { %331 = vmatpush.bf16.msra.mxu0 %v1150_v44  ;;  %v1392_v63 = vld [vmem:[#allocation5 + $0xa4] sm:$0xf0]  ;;  %v1135_v1 = vld [vmem:[#allocation5 + $0x28] sm:$0xf0]  ;;  %v1391_v2 = vld [vmem:[#allocation5 + $0xa4] sm:$0xf]  ;;  %v1134_v4 = vor.u32 %v1376_v60, %v1133_v59 }
  0x25   :  { %380 = vmatpush.bf16.msra.mxu1 %v1214_v45  ;;  %v1199_v3 = vld [vmem:[#allocation5 + $0xa8] sm:$0xf0]  ;;  %v1198_v5 = vor.u32 %v1392_v63, %v1197_v61  ;;  %v1138_v6 = vor.u32 %v1375_v0, %v1135_v1  ;;  %v1125_v7 = vld [vmem:[#allocation5 + $0x10] sm:$0xf]  ;;  %v1374_v8 = vld [vmem:[#allocation5 + $0x14] sm:$0xf0] }
  0x26   :  { %429 = vmatpush.bf16.msra.mxu2 %v1154_v46  ;;  %v1189_v9 = vld [vmem:[#allocation5 + $0x90] sm:$0xf]  ;;  %v1202_v10 = vor.u32 %v1391_v2, %v1199_v3  ;;  %v1390_v11 = vld [vmem:[#allocation5 + $0x94] sm:$0xf0]  ;;  %v1373_v12 = vld [vmem:[#allocation5 + $0x14] sm:$0xf]  ;;  %v1126_v16 = vor.u32 %v1374_v8, %v1125_v7 }
  0x27   :  { %478 = vmatpush.bf16.msra.mxu3 %v1218_v50  ;;  %v1127_v13 = vld [vmem:[#allocation5 + $0x18] sm:$0xf0]  ;;  %v1389_v14 = vld [vmem:[#allocation5 + $0x94] sm:$0xf]  ;;  %v1117_v17 = vld [vmem:[#allocation5] sm:$0xf]  ;;  %v1190_v19 = vor.u32 %v1390_v11, %v1189_v9 }
  0x28   :  { %332 = vmatpush.bf16.msra.mxu0 %v1142_v56  ;;  %v1191_v15 = vld [vmem:[#allocation5 + $0x98] sm:$0xf0]  ;;  %v1372_v18 = vld [vmem:[#allocation5 + $0x4] sm:$0xf0]  ;;  %v1130_v20 = vor.u32 %v1373_v12, %v1127_v13  ;;  %v1181_v21 = vld [vmem:[#allocation5 + $0x80] sm:$0xf] }
  0x29   :  { %381 = vmatpush.bf16.msra.mxu1 %v1206_v57  ;;  %v1388_v22 = vld [vmem:[#allocation5 + $0x84] sm:$0xf0]  ;;  %v1371_v23 = vld [vmem:[#allocation5 + $0x4] sm:$0xf]  ;;  %v1194_v24 = vor.u32 %v1389_v14, %v1191_v15  ;;  %v1119_v25 = vld [vmem:[#allocation5 + $0x8] sm:$0xf0]  ;;  %v1118_v31 = vor.u32 %v1372_v18, %v1117_v17 }
  0x2a   :  { %430 = vmatpush.bf16.msra.mxu2 %v1146_v58  ;;  %v1387_v26 = vld [vmem:[#allocation5 + $0x84] sm:$0xf]  ;;  %v1183_v27 = vld [vmem:[#allocation5 + $0x88] sm:$0xf0]  ;;  %v1417_v29 = vld [vmem:[#allocation8 + $0x74] sm:$0xf]  ;;  %v1182_v35 = vor.u32 %v1388_v22, %v1181_v21  ;;  %v1122_v36 = vor.u32 %v1371_v23, %v1119_v25 }
  0x2b   :  { %479 = vmatpush.bf16.msra.mxu3 %v1210_v62  ;;  %v82_v28 = vld [vmem:[#allocation2] sm:$0xff]  ;;  %v84_v32 = vld [vmem:[#allocation2 + $0x10] sm:$0xff]  ;;  %v83_v37 = vld [vmem:[#allocation2 + $0x8] sm:$0xff]  ;;  %v1186_v39 = vor.u32 %v1387_v26, %v1183_v27 }
  0x2c   :  { %333 = vmatpush.bf16.msra.mxu0 %v1134_v4  ;;  %v1303_v30 = vld [vmem:[#allocation8 + $0x78] sm:$0xf0]  ;;  %v1433_v33 = vld [vmem:[#allocation8 + $0xf4] sm:$0xf]  ;;  %v1301_v41 = vld [vmem:[#allocation8 + $0x70] sm:$0xf]  ;;  %v114_v43 = vpack.c.bf16 %v84_v32, %v82_v28 }
  0x2d   :  { %382 = vmatpush.bf16.msra.mxu1 %v1198_v5  ;;  %v1367_v34 = vld [vmem:[#allocation8 + $0xf8] sm:$0xf0]  ;;  %v1306_v40 = vor.u32 %v1417_v29, %v1303_v30  ;;  %v1418_v42 = vld [vmem:[#allocation8 + $0x74] sm:$0xf0]  ;;  %v1365_v45 = vld [vmem:[#allocation8 + $0xf0] sm:$0xf] }
  0x2e   :  { %431 = vmatpush.bf16.msra.mxu2 %v1138_v6  ;;  %v85_v38 = vld [vmem:[#allocation2 + $0x18] sm:$0xff]  ;;  %v1370_v44 = vor.u32 %v1433_v33, %v1367_v34  ;;  %v1302_v48 = vor.u32 %v1418_v42, %v1301_v41  ;;  %v1415_v50 = vld [vmem:[#allocation8 + $0x64] sm:$0xf]  ;;  %v1295_v51 = vld [vmem:[#allocation8 + $0x68] sm:$0xf0] }
  0x2f   :  { %480 = vmatpush.bf16.msra.mxu3 %v1202_v10  ;;  %v1434_v46 = vld [vmem:[#allocation8 + $0xf4] sm:$0xf0]  ;;  %v115_v47 = vpack.c.bf16 %v85_v38, %v83_v37  ;;  %v1431_v52 = vld [vmem:[#allocation8 + $0xe4] sm:$0xf]  ;;  %v1298_v53 = vor.u32 %v1415_v50, %v1295_v51  ;;  %v1359_v54 = vld [vmem:[#allocation8 + $0xe8] sm:$0xf0] }
  0x30   :  { %334 = vmatpush.bf16.msra.mxu0 %v1126_v16  ;;  %v1366_v49 = vor.u32 %v1434_v46, %v1365_v45  ;;  %v1293_v55 = vld [vmem:[#allocation8 + $0x60] sm:$0xf]  ;;  %v1416_v56 = vld [vmem:[#allocation8 + $0x64] sm:$0xf0]  ;;  %v1362_v57 = vor.u32 %v1431_v52, %v1359_v54  ;;  %v88_v63 = vld [vmem:[#allocation2 + $0x30] sm:$0xff] }
  0x31   :  { %383 = vmatpush.bf16.msra.mxu1 %v1190_v19  ;;  %v1294_v58 = vor.u32 %v1416_v56, %v1293_v55  ;;  %v1357_v59 = vld [vmem:[#allocation8 + $0xe0] sm:$0xf]  ;;  %v1432_v60 = vld [vmem:[#allocation8 + $0xe4] sm:$0xf0]  ;;  %v89_v1 = vld [vmem:[#allocation2 + $0x38] sm:$0xff] }
  0x32   :  { %432 = vmatpush.bf16.msra.mxu2 %v1130_v20  ;;  %v1358_v61 = vor.u32 %v1432_v60, %v1357_v59  ;;  %v86_v62 = vld [vmem:[#allocation2 + $0x20] sm:$0xff]  ;;  %v87_v0 = vld [vmem:[#allocation2 + $0x28] sm:$0xff]  ;;  %v1413_v4 = vld [vmem:[#allocation8 + $0x54] sm:$0xf] }
  0x33   :  { %481 = vmatpush.bf16.msra.mxu3 %v1194_v24  ;;  %v116_v2 = vpack.c.bf16 %v88_v63, %v86_v62  ;;  %v117_v3 = vpack.c.bf16 %v89_v1, %v87_v0  ;;  %v1287_v5 = vld [vmem:[#allocation8 + $0x58] sm:$0xf0]  ;;  %v1429_v6 = vld [vmem:[#allocation8 + $0xd4] sm:$0xf]  ;;  %v1285_v9 = vld [vmem:[#allocation8 + $0x50] sm:$0xf] }
  0x34   :  { %335 = vmatpush.bf16.msra.mxu0 %v1118_v31  ;;  %v1290_v7 = vor.u32 %v1413_v4, %v1287_v5  ;;  %v1351_v8 = vld [vmem:[#allocation8 + $0xd8] sm:$0xf0]  ;;  %v1414_v10 = vld [vmem:[#allocation8 + $0x54] sm:$0xf0]  ;;  %v1349_v13 = vld [vmem:[#allocation8 + $0xd0] sm:$0xf] }
  0x35   :  { %384 = vmatpush.bf16.msra.mxu1 %v1182_v35  ;;  %v1354_v11 = vor.u32 %v1429_v6, %v1351_v8  ;;  %v1286_v12 = vor.u32 %v1414_v10, %v1285_v9  ;;  %v1430_v14 = vld [vmem:[#allocation8 + $0xd4] sm:$0xf0]  ;;  %v90_v16 = vld [vmem:[#allocation2 + $0x40] sm:$0xff]  ;;  %v92_v17 = vld [vmem:[#allocation2 + $0x50] sm:$0xff] }
  0x36   :  { %433 = vmatpush.bf16.msra.mxu2 %v1122_v36  ;;  %v1350_v15 = vor.u32 %v1430_v14, %v1349_v13  ;;  %v91_v18 = vld [vmem:[#allocation2 + $0x48] sm:$0xff]  ;;  %v93_v19 = vld [vmem:[#allocation2 + $0x58] sm:$0xff]  ;;  %v118_v20 = vpack.c.bf16 %v92_v17, %v90_v16  ;;  %v1277_v27 = vld [vmem:[#allocation8 + $0x40] sm:$0xf] }
  0x37   :  { %482 = vmatpush.bf16.msra.mxu3 %v1186_v39  ;;  %336 = vmatmul.bf16.vlgmr.msra.gmra.mxu0 %v114_v43  ;;  %v119_v21 = vpack.c.bf16 %v93_v19, %v91_v18  ;;  %v1411_v22 = vld [vmem:[#allocation8 + $0x44] sm:$0xf]  ;;  %v1279_v23 = vld [vmem:[#allocation8 + $0x48] sm:$0xf0]  ;;  %v1412_v28 = vld [vmem:[#allocation8 + $0x44] sm:$0xf0] }
  0x38   :  { %385 = vmatmul.bf16.vlgmr.msra.gmra.mxu1 %v115_v47  ;;  %802 = vmatpush.bf16.msrb.mxu0 %v1302_v48  ;;  %v1427_v24 = vld [vmem:[#allocation8 + $0xc4] sm:$0xf]  ;;  %v1282_v25 = vor.u32 %v1411_v22, %v1279_v23  ;;  %v1343_v26 = vld [vmem:[#allocation8 + $0xc8] sm:$0xf0]  ;;  %v1278_v30 = vor.u32 %v1412_v28, %v1277_v27  ;;  %v1341_v31 = vld [vmem:[#allocation8 + $0xc0] sm:$0xf] }
  0x39   :  { %434 = vmatmul.bf16.vlgmr.msra.gmra.mxu2 %v114_v43  ;;  %851 = vmatpush.bf16.msrb.mxu1 %v1366_v49  ;;  %v1346_v29 = vor.u32 %v1427_v24, %v1343_v26  ;;  %v1428_v32 = vld [vmem:[#allocation8 + $0xc4] sm:$0xf0]  ;;  %v94_v34 = vld [vmem:[#allocation2 + $0x60] sm:$0xff]  ;;  %v96_v35 = vld [vmem:[#allocation2 + $0x70] sm:$0xff] }
  0x3a   :  { %900 = vmatpush.bf16.msrb.mxu2 %v1306_v40  ;;  %483 = vmatmul.bf16.vlgmr.msra.gmra.mxu3 %v115_v47  ;;  %v1342_v33 = vor.u32 %v1428_v32, %v1341_v31  ;;  %v95_v36 = vld [vmem:[#allocation2 + $0x68] sm:$0xff]  ;;  %v97_v37 = vld [vmem:[#allocation2 + $0x78] sm:$0xff]  ;;  %v120_v38 = vpack.c.bf16 %v96_v35, %v94_v34  ;;  %v1269_v45 = vld [vmem:[#allocation8 + $0x30] sm:$0xf] }
  0x3b   :  { %949 = vmatpush.bf16.msrb.mxu3 %v1370_v44  ;;  %v121_v39 = vpack.c.bf16 %v97_v37, %v95_v36  ;;  %v1409_v40 = vld [vmem:[#allocation8 + $0x34] sm:$0xf]  ;;  %v1271_v41 = vld [vmem:[#allocation8 + $0x38] sm:$0xf0]  ;;  %v1410_v46 = vld [vmem:[#allocation8 + $0x34] sm:$0xf0] }
  0x3c   :  { %803 = vmatpush.bf16.msrb.mxu0 %v1294_v58  ;;  %v1425_v42 = vld [vmem:[#allocation8 + $0xb4] sm:$0xf]  ;;  %v1274_v43 = vor.u32 %v1409_v40, %v1271_v41  ;;  %v1335_v44 = vld [vmem:[#allocation8 + $0xb8] sm:$0xf0]  ;;  %v1270_v48 = vor.u32 %v1410_v46, %v1269_v45  ;;  %v1333_v49 = vld [vmem:[#allocation8 + $0xb0] sm:$0xf] }
  0x3d   :  { %852 = vmatpush.bf16.msrb.mxu1 %v1358_v61  ;;  %v1338_v47 = vor.u32 %v1425_v42, %v1335_v44  ;;  %v1426_v50 = vld [vmem:[#allocation8 + $0xb4] sm:$0xf0]  ;;  %v98_v52 = vld [vmem:[#allocation2 + $0x80] sm:$0xff]  ;;  %v99_v54 = vld [vmem:[#allocation2 + $0x88] sm:$0xff] }
  0x3e   :  { %901 = vmatpush.bf16.msrb.mxu2 %v1298_v53  ;;  %v1334_v51 = vor.u32 %v1426_v50, %v1333_v49  ;;  %v100_v53 = vld [vmem:[#allocation2 + $0x90] sm:$0xff]  ;;  %v101_v55 = vld [vmem:[#allocation2 + $0x98] sm:$0xff]  ;;  %v1407_v58 = vld [vmem:[#allocation8 + $0x24] sm:$0xf] }
  0x3f   :  { %950 = vmatpush.bf16.msrb.mxu3 %v1362_v57  ;;  %v122_v56 = vpack.c.bf16 %v100_v53, %v98_v52  ;;  %v123_v57 = vpack.c.bf16 %v101_v55, %v99_v54  ;;  %v1263_v59 = vld [vmem:[#allocation8 + $0x28] sm:$0xf0]  ;;  %v1423_v60 = vld [vmem:[#allocation8 + $0xa4] sm:$0xf]  ;;  %v1261_v63 = vld [vmem:[#allocation8 + $0x20] sm:$0xf] }
  0x40   :  { %804 = vmatpush.bf16.msrb.mxu0 %v1286_v12  ;;  %v1266_v61 = vor.u32 %v1407_v58, %v1263_v59  ;;  %v1327_v62 = vld [vmem:[#allocation8 + $0xa8] sm:$0xf0]  ;;  %v1408_v0 = vld [vmem:[#allocation8 + $0x24] sm:$0xf0]  ;;  %v102_v6 = vld [vmem:[#allocation2 + $0xa0] sm:$0xff] }
  0x41   :  { %853 = vmatpush.bf16.msrb.mxu1 %v1350_v15  ;;  %v1330_v1 = vor.u32 %v1423_v60, %v1327_v62  ;;  %v1424_v4 = vld [vmem:[#allocation8 + $0xa4] sm:$0xf0]  ;;  %v105_v9 = vld [vmem:[#allocation2 + $0xb8] sm:$0xff]  ;;  %v1253_v17 = vld [vmem:[#allocation8 + $0x10] sm:$0xf] }
  0x42   :  { %902 = vmatpush.bf16.msrb.mxu2 %v1290_v7  ;;  %v104_v7 = vld [vmem:[#allocation2 + $0xb0] sm:$0xff]  ;;  %v103_v8 = vld [vmem:[#allocation2 + $0xa8] sm:$0xff]  ;;  %v1255_v13 = vld [vmem:[#allocation8 + $0x18] sm:$0xf0] }
  0x43   :  { %951 = vmatpush.bf16.msrb.mxu3 %v1354_v11  ;;  %v124_v10 = vpack.c.bf16 %v104_v7, %v102_v6  ;;  %v125_v11 = vpack.c.bf16 %v105_v9, %v103_v8  ;;  %v1405_v12 = vld [vmem:[#allocation8 + $0x14] sm:$0xf]  ;;  %v1319_v16 = vld [vmem:[#allocation8 + $0x98] sm:$0xf0]  ;;  %v1406_v18 = vld [vmem:[#allocation8 + $0x14] sm:$0xf0] }
  0x44   :  { %805 = vmatpush.bf16.msrb.mxu0 %v1278_v30  ;;  %v1421_v14 = vld [vmem:[#allocation8 + $0x94] sm:$0xf]  ;;  %v1258_v15 = vor.u32 %v1405_v12, %v1255_v13  ;;  %v1422_v22 = vld [vmem:[#allocation8 + $0x94] sm:$0xf0]  ;;  %v106_v24 = vld [vmem:[#allocation2 + $0xc0] sm:$0xff] }
  0x45   :  { %854 = vmatpush.bf16.msrb.mxu1 %v1342_v33  ;;  %v1322_v19 = vor.u32 %v1421_v14, %v1319_v16  ;;  %v107_v26 = vld [vmem:[#allocation2 + $0xc8] sm:$0xff]  ;;  %v109_v27 = vld [vmem:[#allocation2 + $0xd8] sm:$0xff]  ;;  %v110_v30 = vld [vmem:[#allocation2 + $0xe0] sm:$0xff] }
  0x46   :  { %903 = vmatpush.bf16.msrb.mxu2 %v1282_v25  ;;  %v108_v25 = vld [vmem:[#allocation2 + $0xd0] sm:$0xff]  ;;  %v111_v32 = vld [vmem:[#allocation2 + $0xe8] sm:$0xff]  ;;  %v113_v33 = vld [vmem:[#allocation2 + $0xf8] sm:$0xff] }
  0x47   :  { %341 = vmatmul.bf16.gmra.mxu0 %v116_v2  ;;  %952 = vmatpush.bf16.msrb.mxu3 %v1346_v29  ;;  %v126_v28 = vpack.c.bf16 %v108_v25, %v106_v24  ;;  %v127_v29 = vpack.c.bf16 %v109_v27, %v107_v26  ;;  %v112_v31 = vld [vmem:[#allocation2 + $0xf0] sm:$0xff]  ;;  %v1403_v34 = vld [vmem:[#allocation8 + $0x4] sm:$0xf]  ;;  %v1245_v40 = vld [vmem:[#allocation8] sm:$0xf]  ;;  %v129_v41 = vpack.c.bf16 %v113_v33, %v111_v32 }
  0x48   :  { %390 = vmatmul.bf16.gmra.mxu1 %v117_v3  ;;  %806 = vmatpush.bf16.msrb.mxu0 %v1270_v48  ;;  %v1247_v35 = vld [vmem:[#allocation8 + $0x8] sm:$0xf0]  ;;  %v128_v36 = vpack.c.bf16 %v112_v31, %v110_v30  ;;  %v1309_v45 = vld [vmem:[#allocation8 + $0x80] sm:$0xf]  ;;  %v1420_v46 = vld [vmem:[#allocation8 + $0x84] sm:$0xf0] }
  0x49   :  { %439 = vmatmul.bf16.gmra.mxu2 %v116_v2  ;;  %855 = vmatpush.bf16.msrb.mxu1 %v1334_v51  ;;  %v1262_v2 = vor.u32 %v1408_v0, %v1261_v63  ;;  %v1250_v37 = vor.u32 %v1403_v34, %v1247_v35  ;;  %v162_v48 = vld [vmem:[#allocation7] sm:$0x3] }
  0x4a   :  { %488 = vmatmul.bf16.gmra.mxu3 %v117_v3  ;;  %904 = vmatpush.bf16.msrb.mxu2 %v1274_v43  ;;  %v1325_v3 = vld [vmem:[#allocation8 + $0xa0] sm:$0xf]  ;;  %v1404_v43 = vld [vmem:[#allocation8 + $0x4] sm:$0xf0]  ;;  %v1626_v49 = vperm.slane %v162_v48, 0  ;;  %v1629_v53 = vperm.slane %v162_v48, 1 }
  0x4b   :  { %953 = vmatpush.bf16.msrb.mxu3 %v1338_v47  ;;  %v1326_v5 = vor.u32 %v1424_v4, %v1325_v3  ;;  %v1246_v44 = vor.u32 %v1404_v43, %v1245_v40  ;;  %v1310_v47 = vor.u32 %v1420_v46, %v1309_v45 }
  0x4c   :  { %807 = vmatpush.bf16.msrb.mxu0 %v1262_v2 }
  0x4d   :  { %856 = vmatpush.bf16.msrb.mxu1 %v1326_v5 }
  0x4e   :  { %905 = vmatpush.bf16.msrb.mxu2 %v1266_v61 }
  0x4f   :  { %954 = vmatpush.bf16.msrb.mxu3 %v1330_v1 }
  0x52   :  { %906 = vmatpush.bf16.msrb.mxu2 %v1258_v15 }
  0x53   :  { %955 = vmatpush.bf16.msrb.mxu3 %v1322_v19 }
  0x56   :  { %907 = vmatpush.bf16.msrb.mxu2 %v1250_v37 }
  0x57   :  { %346 = vmatmul.bf16.gmra.mxu0 %v118_v20 }
  0x58   :  { %395 = vmatmul.bf16.gmra.mxu1 %v119_v21 }
  0x59   :  { %444 = vmatmul.bf16.gmra.mxu2 %v118_v20  ;;  %v1254_v20 = vor.u32 %v1406_v18, %v1253_v17 }
  0x5a   :  { %493 = vmatmul.bf16.gmra.mxu3 %v119_v21  ;;  %v1317_v21 = vld [vmem:[#allocation8 + $0x90] sm:$0xf] }
  0x5b   :  { %v1318_v23 = vor.u32 %v1422_v22, %v1317_v21  ;;  %808 = vmatpush.bf16.msrb.mxu0 %v1254_v20 }
  0x5d   :  { %857 = vmatpush.bf16.msrb.mxu1 %v1318_v23 }
  0x5f   :  { %809 = vmatpush.bf16.msrb.mxu0 %v1246_v44 }
  0x61   :  { %858 = vmatpush.bf16.msrb.mxu1 %v1310_v47 }
  0x67   :  { %351 = vmatmul.bf16.gmra.mxu0 %v120_v38 }
  0x68   :  { %400 = vmatmul.bf16.gmra.mxu1 %v121_v39 }
  0x69   :  { %449 = vmatmul.bf16.gmra.mxu2 %v120_v38  ;;  %v1419_v38 = vld [vmem:[#allocation8 + $0x84] sm:$0xf] }
  0x6a   :  { %498 = vmatmul.bf16.gmra.mxu3 %v121_v39  ;;  %v1311_v39 = vld [vmem:[#allocation8 + $0x88] sm:$0xf0] }
  0x6b   :  { %v1314_v42 = vor.u32 %v1419_v38, %v1311_v39 }
  0x6d   :  { %956 = vmatpush.bf16.msrb.mxu3 %v1314_v42 }
  0x77   :  { %356 = vmatmul.bf16.gmra.mxu0 %v122_v56 }
  0x78   :  { %405 = vmatmul.bf16.gmra.mxu1 %v123_v57 }
  0x79   :  { %454 = vmatmul.bf16.gmra.mxu2 %v122_v56 }
  0x7a   :  { %503 = vmatmul.bf16.gmra.mxu3 %v123_v57 }
  0x87   :  { %361 = vmatmul.bf16.gmra.mxu0 %v124_v10 }
  0x88   :  { %410 = vmatmul.bf16.gmra.mxu1 %v125_v11 }
  0x89   :  { %459 = vmatmul.bf16.gmra.mxu2 %v124_v10 }
  0x8a   :  { %508 = vmatmul.bf16.gmra.mxu3 %v125_v11 }
  0x97   :  { %366 = vmatmul.bf16.gmra.mxu0 %v126_v28 }
  0x98   :  { %415 = vmatmul.bf16.gmra.mxu1 %v127_v29 }
  0x99   :  { %464 = vmatmul.bf16.gmra.mxu2 %v126_v28 }
  0x9a   :  { %513 = vmatmul.bf16.gmra.mxu3 %v127_v29 }
  0xa7   :  { %371 = vmatmul.bf16.gmra.mxu0 %v128_v36 }
  0xa8   :  { %420 = vmatmul.bf16.gmra.mxu1 %v129_v41 }
  0xa9   :  { %469 = vmatmul.bf16.gmra.mxu2 %v128_v36 }
  0xaa   :  { %518 = vmatmul.bf16.gmra.mxu3 %v129_v41 }
  0xb4   :  { %v337_v50 = vpop.f32.mrf.mxu0 }
  0xb5   :  { %v386_v51 = vpop.f32.mrf.mxu1  ;;  %v338_v52 = vadd.f32 %v337_v50, %v1626_v49 }
  0xb7   :  { %v387_v54 = vadd.f32 %v386_v51, %v338_v52 }
  0xb9   :  { %v524_v61 = vmul.f32 0.2, %v387_v54 }
  0xbb   :  { %v556_v1 = vmax.f32 %v387_v54, %v524_v61 }
  0xbc   :  { %v435_v55 = vpop.f32.mrf.mxu2  ;;  %v339_v57 = vpop.f32.mrf.mxu0 }
  0xbd   :  { %v484_v56 = vpop.f32.mrf.mxu3  ;;  %v340_v58 = vadd.f32 %v339_v57, %v1626_v49  ;;  %v388_v59 = vpop.f32.mrf.mxu1  ;;  %v436_v60 = vadd.f32 %v435_v55, %v1629_v53 }
  0xbf   :  { %v389_v62 = vadd.f32 %v388_v59, %v340_v58  ;;  %v485_v0 = vadd.f32 %v484_v56, %v436_v60 }
  0xc1   :  { %v526_v63 = vmul.f32 0.2, %v389_v62  ;;  %v525_v9 = vmul.f32 0.2, %v485_v0 }
  0xc3   :  { %v558_v2 = vmax.f32 %v389_v62, %v526_v63  ;;  %v557_v13 = vmax.f32 %v485_v0, %v525_v9 }
  0xc4   :  { %v437_v3 = vpop.f32.mrf.mxu2  ;;  %v342_v6 = vpop.f32.mrf.mxu0 }
  0xc5   :  { %v438_v4 = vadd.f32 %v437_v3, %v1629_v53  ;;  %v486_v5 = vpop.f32.mrf.mxu3  ;;  %v391_v7 = vpop.f32.mrf.mxu1  ;;  %v588_v8 = vpack.c.bf16 %v558_v2, %v556_v1  ;;  %v343_v11 = vadd.f32 %v342_v6, %v1626_v49 }
  0xc7   :  { %v487_v10 = vadd.f32 %v486_v5, %v438_v4  ;;  %810 = vmatmul.bf16.vlgmr.msrb.gmra.mxu0 %v588_v8  ;;  %908 = vmatmul.bf16.vlgmr.msrb.gmra.mxu2 %v588_v8  ;;  %v392_v15 = vadd.f32 %v391_v7, %v343_v11 }
  0xc9   :  { %v527_v12 = vmul.f32 0.2, %v487_v10  ;;  %v528_v23 = vmul.f32 0.2, %v392_v15 }
  0xcb   :  { %v559_v14 = vmax.f32 %v487_v10, %v527_v12  ;;  %v560_v27 = vmax.f32 %v392_v15, %v528_v23 }
  0xcc   :  { %v440_v16 = vpop.f32.mrf.mxu2  ;;  %v344_v18 = vpop.f32.mrf.mxu0 }
  0xcd   :  { %v489_v17 = vpop.f32.mrf.mxu3  ;;  %v589_v19 = vpack.c.bf16 %v559_v14, %v557_v13  ;;  %v345_v20 = vadd.f32 %v344_v18, %v1626_v49  ;;  %v393_v21 = vpop.f32.mrf.mxu1  ;;  %v441_v22 = vadd.f32 %v440_v16, %v1629_v53 }
  0xcf   :  { %859 = vmatmul.bf16.vlgmr.msrb.gmra.mxu1 %v589_v19  ;;  %957 = vmatmul.bf16.vlgmr.msrb.gmra.mxu3 %v589_v19  ;;  %v394_v24 = vadd.f32 %v393_v21, %v345_v20  ;;  %v490_v26 = vadd.f32 %v489_v17, %v441_v22 }
  0xd1   :  { %v530_v25 = vmul.f32 0.2, %v394_v24  ;;  %v529_v35 = vmul.f32 0.2, %v490_v26 }
  0xd3   :  { %v562_v29 = vmax.f32 %v394_v24, %v530_v25  ;;  %v561_v39 = vmax.f32 %v490_v26, %v529_v35 }
  0xd4   :  { %v442_v28 = vpop.f32.mrf.mxu2  ;;  %v347_v32 = vpop.f32.mrf.mxu0 }
  0xd5   :  { %v443_v30 = vadd.f32 %v442_v28, %v1629_v53  ;;  %v491_v31 = vpop.f32.mrf.mxu3  ;;  %v396_v33 = vpop.f32.mrf.mxu1  ;;  %v590_v34 = vpack.c.bf16 %v562_v29, %v560_v27  ;;  %v348_v37 = vadd.f32 %v347_v32, %v1626_v49 }
  0xd7   :  { %v492_v36 = vadd.f32 %v491_v31, %v443_v30  ;;  %815 = vmatmul.bf16.gmra.mxu0 %v590_v34  ;;  %913 = vmatmul.bf16.gmra.mxu2 %v590_v34  ;;  %v397_v41 = vadd.f32 %v396_v33, %v348_v37 }
  0xd9   :  { %v531_v38 = vmul.f32 0.2, %v492_v36  ;;  %v532_v50 = vmul.f32 0.2, %v397_v41 }
  0xdb   :  { %v563_v40 = vmax.f32 %v492_v36, %v531_v38  ;;  %v564_v55 = vmax.f32 %v397_v41, %v532_v50 }
  0xdc   :  { %v445_v42 = vpop.f32.mrf.mxu2  ;;  %v349_v44 = vpop.f32.mrf.mxu0 }
  0xdd   :  { %v494_v43 = vpop.f32.mrf.mxu3  ;;  %v591_v45 = vpack.c.bf16 %v563_v40, %v561_v39  ;;  %v350_v46 = vadd.f32 %v349_v44, %v1626_v49  ;;  %v398_v47 = vpop.f32.mrf.mxu1  ;;  %v446_v48 = vadd.f32 %v445_v42, %v1629_v53 }
  0xdf   :  { %864 = vmatmul.bf16.gmra.mxu1 %v591_v45  ;;  %962 = vmatmul.bf16.gmra.mxu3 %v591_v45  ;;  %v399_v51 = vadd.f32 %v398_v47, %v350_v46  ;;  %v495_v54 = vadd.f32 %v494_v43, %v446_v48 }
  0xe1   :  { %v534_v52 = vmul.f32 0.2, %v399_v51  ;;  %v533_v63 = vmul.f32 0.2, %v495_v54 }
  0xe3   :  { %v566_v57 = vmax.f32 %v399_v51, %v534_v52  ;;  %v565_v3 = vmax.f32 %v495_v54, %v533_v63 }
  0xe4   :  { %v447_v56 = vpop.f32.mrf.mxu2  ;;  %v352_v60 = vpop.f32.mrf.mxu0 }
  0xe5   :  { %v448_v58 = vadd.f32 %v447_v56, %v1629_v53  ;;  %v496_v59 = vpop.f32.mrf.mxu3  ;;  %v401_v61 = vpop.f32.mrf.mxu1  ;;  %v592_v62 = vpack.c.bf16 %v566_v57, %v564_v55  ;;  %v353_v1 = vadd.f32 %v352_v60, %v1626_v49 }
  0xe7   :  { %v497_v0 = vadd.f32 %v496_v59, %v448_v58  ;;  %820 = vmatmul.bf16.gmra.mxu0 %v592_v62  ;;  %918 = vmatmul.bf16.gmra.mxu2 %v592_v62  ;;  %v402_v5 = vadd.f32 %v401_v61, %v353_v1 }
  0xe9   :  { %v535_v2 = vmul.f32 0.2, %v497_v0  ;;  %v536_v13 = vmul.f32 0.2, %v402_v5 }
  0xeb   :  { %v567_v4 = vmax.f32 %v497_v0, %v535_v2  ;;  %v568_v17 = vmax.f32 %v402_v5, %v536_v13 }
  0xec   :  { %v450_v6 = vpop.f32.mrf.mxu2  ;;  %v354_v8 = vpop.f32.mrf.mxu0 }
  0xed   :  { %v499_v7 = vpop.f32.mrf.mxu3  ;;  %v593_v9 = vpack.c.bf16 %v567_v4, %v565_v3  ;;  %v355_v10 = vadd.f32 %v354_v8, %v1626_v49  ;;  %v403_v11 = vpop.f32.mrf.mxu1  ;;  %v451_v12 = vadd.f32 %v450_v6, %v1629_v53 }
  0xef   :  { %869 = vmatmul.bf16.gmra.mxu1 %v593_v9  ;;  %967 = vmatmul.bf16.gmra.mxu3 %v593_v9  ;;  %v404_v14 = vadd.f32 %v403_v11, %v355_v10  ;;  %v500_v16 = vadd.f32 %v499_v7, %v451_v12 }
  0xf1   :  { %v538_v15 = vmul.f32 0.2, %v404_v14  ;;  %v537_v25 = vmul.f32 0.2, %v500_v16 }
  0xf3   :  { %v570_v19 = vmax.f32 %v404_v14, %v538_v15  ;;  %v569_v29 = vmax.f32 %v500_v16, %v537_v25 }
  0xf4   :  { %v452_v18 = vpop.f32.mrf.mxu2  ;;  %v357_v22 = vpop.f32.mrf.mxu0 }
  0xf5   :  { %v453_v20 = vadd.f32 %v452_v18, %v1629_v53  ;;  %v501_v21 = vpop.f32.mrf.mxu3  ;;  %v406_v23 = vpop.f32.mrf.mxu1  ;;  %v594_v24 = vpack.c.bf16 %v570_v19, %v568_v17  ;;  %v358_v27 = vadd.f32 %v357_v22, %v1626_v49 }
  0xf7   :  { %v502_v26 = vadd.f32 %v501_v21, %v453_v20  ;;  %825 = vmatmul.bf16.gmra.mxu0 %v594_v24  ;;  %923 = vmatmul.bf16.gmra.mxu2 %v594_v24  ;;  %v407_v31 = vadd.f32 %v406_v23, %v358_v27 }
  0xf9   :  { %v539_v28 = vmul.f32 0.2, %v502_v26  ;;  %v540_v39 = vmul.f32 0.2, %v407_v31 }
  0xfb   :  { %v571_v30 = vmax.f32 %v502_v26, %v539_v28  ;;  %v572_v43 = vmax.f32 %v407_v31, %v540_v39 }
  0xfc   :  { %v455_v32 = vpop.f32.mrf.mxu2  ;;  %v359_v34 = vpop.f32.mrf.mxu0 }
  0xfd   :  { %v504_v33 = vpop.f32.mrf.mxu3  ;;  %v595_v35 = vpack.c.bf16 %v571_v30, %v569_v29  ;;  %v360_v36 = vadd.f32 %v359_v34, %v1626_v49  ;;  %v408_v37 = vpop.f32.mrf.mxu1  ;;  %v456_v38 = vadd.f32 %v455_v32, %v1629_v53 }
  0xff   :  { %874 = vmatmul.bf16.gmra.mxu1 %v595_v35  ;;  %972 = vmatmul.bf16.gmra.mxu3 %v595_v35  ;;  %v409_v40 = vadd.f32 %v408_v37, %v360_v36  ;;  %v505_v42 = vadd.f32 %v504_v33, %v456_v38 }
 0x101   :  { %v542_v41 = vmul.f32 0.2, %v409_v40  ;;  %v541_v52 = vmul.f32 0.2, %v505_v42 }
 0x103   :  { %v574_v44 = vmax.f32 %v409_v40, %v542_v41  ;;  %v573_v57 = vmax.f32 %v505_v42, %v541_v52 }
 0x104   :  { %v457_v45 = vpop.f32.mrf.mxu2  ;;  %v362_v48 = vpop.f32.mrf.mxu0 }
 0x105   :  { %v458_v46 = vadd.f32 %v457_v45, %v1629_v53  ;;  %v506_v47 = vpop.f32.mrf.mxu3  ;;  %v411_v50 = vpop.f32.mrf.mxu1  ;;  %v596_v51 = vpack.c.bf16 %v574_v44, %v572_v43  ;;  %v363_v55 = vadd.f32 %v362_v48, %v1626_v49 }
 0x107   :  { %v507_v54 = vadd.f32 %v506_v47, %v458_v46  ;;  %830 = vmatmul.bf16.gmra.mxu0 %v596_v51  ;;  %928 = vmatmul.bf16.gmra.mxu2 %v596_v51  ;;  %v412_v59 = vadd.f32 %v411_v50, %v363_v55 }
 0x109   :  { %v543_v56 = vmul.f32 0.2, %v507_v54  ;;  %v544_v3 = vmul.f32 0.2, %v412_v59 }
 0x10b   :  { %v575_v58 = vmax.f32 %v507_v54, %v543_v56  ;;  %v576_v7 = vmax.f32 %v412_v59, %v544_v3 }
 0x10c   :  { %v460_v60 = vpop.f32.mrf.mxu2  ;;  %v364_v62 = vpop.f32.mrf.mxu0 }
 0x10d   :  { %v509_v61 = vpop.f32.mrf.mxu3  ;;  %v597_v63 = vpack.c.bf16 %v575_v58, %v573_v57  ;;  %v365_v0 = vadd.f32 %v364_v62, %v1626_v49  ;;  %v413_v1 = vpop.f32.mrf.mxu1  ;;  %v461_v2 = vadd.f32 %v460_v60, %v1629_v53 }
 0x10f   :  { %879 = vmatmul.bf16.gmra.mxu1 %v597_v63  ;;  %977 = vmatmul.bf16.gmra.mxu3 %v597_v63  ;;  %v414_v4 = vadd.f32 %v413_v1, %v365_v0  ;;  %v510_v6 = vadd.f32 %v509_v61, %v461_v2 }
 0x111   :  { %v546_v5 = vmul.f32 0.2, %v414_v4  ;;  %v545_v15 = vmul.f32 0.2, %v510_v6 }
 0x113   :  { %v578_v8 = vmax.f32 %v414_v4, %v546_v5  ;;  %v577_v19 = vmax.f32 %v510_v6, %v545_v15 }
 0x114   :  { %v462_v9 = vpop.f32.mrf.mxu2  ;;  %v367_v12 = vpop.f32.mrf.mxu0 }
 0x115   :  { %v463_v10 = vadd.f32 %v462_v9, %v1629_v53  ;;  %v511_v11 = vpop.f32.mrf.mxu3  ;;  %v416_v13 = vpop.f32.mrf.mxu1  ;;  %v598_v14 = vpack.c.bf16 %v578_v8, %v576_v7  ;;  %v368_v17 = vadd.f32 %v367_v12, %v1626_v49  ;;  %v636_v8 = vld [vmem:[%s1711_s4] sm:$0x3] }
 0x117   :  { %v512_v16 = vadd.f32 %v511_v11, %v463_v10  ;;  %835 = vmatmul.bf16.gmra.mxu0 %v598_v14  ;;  %933 = vmatmul.bf16.gmra.mxu2 %v598_v14  ;;  %v417_v21 = vadd.f32 %v416_v13, %v368_v17  ;;  %v1665_v10 = vperm.slane %v636_v8, 0  ;;  %v1668_v14 = vperm.slane %v636_v8, 1 }
 0x119   :  { %v547_v18 = vmul.f32 0.2, %v512_v16  ;;  %v548_v29 = vmul.f32 0.2, %v417_v21 }
 0x11b   :  { %v579_v20 = vmax.f32 %v512_v16, %v547_v18  ;;  %v580_v33 = vmax.f32 %v417_v21, %v548_v29 }
 0x11c   :  { %v465_v22 = vpop.f32.mrf.mxu2  ;;  %v369_v24 = vpop.f32.mrf.mxu0 }
 0x11d   :  { %v514_v23 = vpop.f32.mrf.mxu3  ;;  %v599_v25 = vpack.c.bf16 %v579_v20, %v577_v19  ;;  %v370_v26 = vadd.f32 %v369_v24, %v1626_v49  ;;  %v418_v27 = vpop.f32.mrf.mxu1  ;;  %v466_v28 = vadd.f32 %v465_v22, %v1629_v53 }
 0x11f   :  { %884 = vmatmul.bf16.gmra.mxu1 %v599_v25  ;;  %982 = vmatmul.bf16.gmra.mxu3 %v599_v25  ;;  %v419_v30 = vadd.f32 %v418_v27, %v370_v26  ;;  %v515_v32 = vadd.f32 %v514_v23, %v466_v28 }
 0x121   :  { %v550_v31 = vmul.f32 0.2, %v419_v30  ;;  %v549_v41 = vmul.f32 0.2, %v515_v32 }
 0x123   :  { %v582_v34 = vmax.f32 %v419_v30, %v550_v31  ;;  %v581_v45 = vmax.f32 %v515_v32, %v549_v41 }
 0x124   :  { %v467_v35 = vpop.f32.mrf.mxu2  ;;  %v372_v38 = vpop.f32.mrf.mxu0 }
 0x125   :  { %v468_v36 = vadd.f32 %v467_v35, %v1629_v53  ;;  %v516_v37 = vpop.f32.mrf.mxu3  ;;  %v421_v39 = vpop.f32.mrf.mxu1  ;;  %v600_v40 = vpack.c.bf16 %v582_v34, %v580_v33  ;;  %v373_v43 = vadd.f32 %v372_v38, %v1626_v49 }
 0x127   :  { %v517_v42 = vadd.f32 %v516_v37, %v468_v36  ;;  %840 = vmatmul.bf16.gmra.mxu0 %v600_v40  ;;  %938 = vmatmul.bf16.gmra.mxu2 %v600_v40  ;;  %v422_v47 = vadd.f32 %v421_v39, %v373_v43 }
 0x129   :  { %v551_v44 = vmul.f32 0.2, %v517_v42  ;;  %v552_v57 = vmul.f32 0.2, %v422_v47 }
 0x12b   :  { %v583_v46 = vmax.f32 %v517_v42, %v551_v44  ;;  %v584_v61 = vmax.f32 %v422_v47, %v552_v57 }
 0x12c   :  { %v470_v48 = vpop.f32.mrf.mxu2  ;;  %v374_v51 = vpop.f32.mrf.mxu0 }
 0x12d   :  { %v519_v50 = vpop.f32.mrf.mxu3  ;;  %v601_v52 = vpack.c.bf16 %v583_v46, %v581_v45  ;;  %v375_v54 = vadd.f32 %v374_v51, %v1626_v49  ;;  %v471_v55 = vadd.f32 %v470_v48, %v1629_v53  ;;  %v423_v56 = vpop.f32.mrf.mxu1 }
 0x12f   :  { %889 = vmatmul.bf16.gmra.mxu1 %v601_v52  ;;  %987 = vmatmul.bf16.gmra.mxu3 %v601_v52  ;;  %v424_v58 = vadd.f32 %v423_v56, %v375_v54  ;;  %v520_v60 = vadd.f32 %v519_v50, %v471_v55 }
 0x131   :  { %v554_v59 = vmul.f32 0.2, %v424_v58  ;;  %v553_v3 = vmul.f32 0.2, %v520_v60 }
 0x133   :  { %v586_v62 = vmax.f32 %v424_v58, %v554_v59  ;;  %v585_v5 = vmax.f32 %v520_v60, %v553_v3 }
 0x134   :  { %v472_v63 = vpop.f32.mrf.mxu2 }
 0x135   :  { %v473_v0 = vadd.f32 %v472_v63, %v1629_v53  ;;  %v521_v1 = vpop.f32.mrf.mxu3  ;;  %v602_v2 = vpack.c.bf16 %v586_v62, %v584_v61 }
 0x137   :  { %v522_v4 = vadd.f32 %v521_v1, %v473_v0  ;;  %845 = vmatmul.bf16.gmra.mxu0 %v602_v2  ;;  %943 = vmatmul.bf16.gmra.mxu2 %v602_v2 }
 0x139   :  { %v555_v49 = vmul.f32 0.2, %v522_v4 }
 0x13b   :  { %v587_v6 = vmax.f32 %v522_v4, %v555_v49 }
 0x13d   :  { %v603_v7 = vpack.c.bf16 %v587_v6, %v585_v5 }
 0x13f   :  { %894 = vmatmul.bf16.gmra.mxu1 %v603_v7  ;;  %992 = vmatmul.bf16.gmra.mxu3 %v603_v7 }
 0x144   :  { %v811_v9 = vpop.f32.mrf.mxu0 }
 0x145   :  { %v812_v53 = vadd.f32 %v811_v9, %v1665_v10 }
 0x14a   :  { %v909_v11 = vpop.f32.mrf.mxu2 }
 0x14b   :  { %v910_v18 = vadd.f32 %v909_v11, %v1668_v14 }
 0x14c   :  { %v860_v12 = vpop.f32.mrf.mxu1  ;;  %v813_v15 = vpop.f32.mrf.mxu0 }
 0x14d   :  { %v861_v13 = vadd.f32 %v860_v12, %v812_v53  ;;  %v814_v20 = vadd.f32 %v813_v15, %v1665_v10 }
 0x14f   :  { %v998_v16 = vmul.f32 0.2, %v861_v13 }
 0x151   :  { %v1030_v17 = vmax.f32 %v861_v13, %v998_v16 }
 0x152   :  { %v958_v19 = vpop.f32.mrf.mxu3  ;;  %v911_v22 = vpop.f32.mrf.mxu2 }
 0x153   :  { %1062 = vst [vmem:[#allocation10] sm:$0xff] %v1030_v17  ;;  %v959_v21 = vadd.f32 %v958_v19, %v910_v18  ;;  %v912_v30 = vadd.f32 %v911_v22, %v1668_v14 }
 0x154   :  { %v862_v23 = vpop.f32.mrf.mxu1  ;;  %v816_v26 = vpop.f32.mrf.mxu0 }
 0x155   :  { %v999_v24 = vmul.f32 0.2, %v959_v21  ;;  %v863_v25 = vadd.f32 %v862_v23, %v814_v20  ;;  %v817_v32 = vadd.f32 %v816_v26, %v1665_v10 }
 0x157   :  { %v1031_v27 = vmax.f32 %v959_v21, %v999_v24  ;;  %v1000_v28 = vmul.f32 0.2, %v863_v25 }
 0x159   :  { %1063 = vst [vmem:[#allocation10 + $0x8] sm:$0xff] %v1031_v27  ;;  %v1032_v29 = vmax.f32 %v863_v25, %v1000_v28 }
 0x15a   :  { %v960_v31 = vpop.f32.mrf.mxu3  ;;  %v914_v34 = vpop.f32.mrf.mxu2 }
 0x15b   :  { %1064 = vst [vmem:[#allocation10 + $0x10] sm:$0xff] %v1032_v29  ;;  %v961_v33 = vadd.f32 %v960_v31, %v912_v30  ;;  %v915_v42 = vadd.f32 %v914_v34, %v1668_v14 }
 0x15c   :  { %v865_v35 = vpop.f32.mrf.mxu1  ;;  %v818_v38 = vpop.f32.mrf.mxu0 }
 0x15d   :  { %v1001_v36 = vmul.f32 0.2, %v961_v33  ;;  %v866_v37 = vadd.f32 %v865_v35, %v817_v32  ;;  %v819_v44 = vadd.f32 %v818_v38, %v1665_v10 }
 0x15f   :  { %v1033_v39 = vmax.f32 %v961_v33, %v1001_v36  ;;  %v1002_v40 = vmul.f32 0.2, %v866_v37 }
 0x161   :  { %1065 = vst [vmem:[#allocation10 + $0x18] sm:$0xff] %v1033_v39  ;;  %v1034_v41 = vmax.f32 %v866_v37, %v1002_v40 }
 0x162   :  { %v963_v43 = vpop.f32.mrf.mxu3  ;;  %v916_v46 = vpop.f32.mrf.mxu2 }
 0x163   :  { %1066 = vst [vmem:[#allocation10 + $0x20] sm:$0xff] %v1034_v41  ;;  %v964_v45 = vadd.f32 %v963_v43, %v915_v42  ;;  %v917_v56 = vadd.f32 %v916_v46, %v1668_v14 }
 0x164   :  { %v867_v47 = vpop.f32.mrf.mxu1  ;;  %v821_v51 = vpop.f32.mrf.mxu0 }
 0x165   :  { %v1003_v48 = vmul.f32 0.2, %v964_v45  ;;  %v868_v50 = vadd.f32 %v867_v47, %v819_v44  ;;  %v822_v58 = vadd.f32 %v821_v51, %v1665_v10 }
 0x167   :  { %v1035_v52 = vmax.f32 %v964_v45, %v1003_v48  ;;  %v1004_v54 = vmul.f32 0.2, %v868_v50 }
 0x169   :  { %1067 = vst [vmem:[#allocation10 + $0x28] sm:$0xff] %v1035_v52  ;;  %v1036_v55 = vmax.f32 %v868_v50, %v1004_v54 }
 0x16a   :  { %v965_v57 = vpop.f32.mrf.mxu3  ;;  %v919_v60 = vpop.f32.mrf.mxu2 }
 0x16b   :  { %1068 = vst [vmem:[#allocation10 + $0x30] sm:$0xff] %v1036_v55  ;;  %v966_v59 = vadd.f32 %v965_v57, %v917_v56  ;;  %v920_v4 = vadd.f32 %v919_v60, %v1668_v14 }
 0x16c   :  { %v870_v61 = vpop.f32.mrf.mxu1  ;;  %v823_v0 = vpop.f32.mrf.mxu0 }
 0x16d   :  { %v1005_v62 = vmul.f32 0.2, %v966_v59  ;;  %v871_v63 = vadd.f32 %v870_v61, %v822_v58  ;;  %v824_v5 = vadd.f32 %v823_v0, %v1665_v10 }
 0x16f   :  { %v1037_v1 = vmax.f32 %v966_v59, %v1005_v62  ;;  %v1006_v2 = vmul.f32 0.2, %v871_v63 }
 0x171   :  { %1069 = vst [vmem:[#allocation10 + $0x38] sm:$0xff] %v1037_v1  ;;  %v1038_v3 = vmax.f32 %v871_v63, %v1006_v2 }
 0x172   :  { %v968_v49 = vpop.f32.mrf.mxu3  ;;  %v921_v7 = vpop.f32.mrf.mxu2 }
 0x173   :  { %1070 = vst [vmem:[#allocation10 + $0x40] sm:$0xff] %v1038_v3  ;;  %v969_v6 = vadd.f32 %v968_v49, %v920_v4  ;;  %v922_v16 = vadd.f32 %v921_v7, %v1668_v14 }
 0x174   :  { %v872_v8 = vpop.f32.mrf.mxu1  ;;  %v826_v11 = vpop.f32.mrf.mxu0 }
 0x175   :  { %v1007_v9 = vmul.f32 0.2, %v969_v6  ;;  %v873_v53 = vadd.f32 %v872_v8, %v824_v5  ;;  %v827_v18 = vadd.f32 %v826_v11, %v1665_v10 }
 0x177   :  { %v1039_v12 = vmax.f32 %v969_v6, %v1007_v9  ;;  %v1008_v13 = vmul.f32 0.2, %v873_v53 }
 0x179   :  { %1071 = vst [vmem:[#allocation10 + $0x48] sm:$0xff] %v1039_v12  ;;  %v1040_v15 = vmax.f32 %v873_v53, %v1008_v13 }
 0x17a   :  { %v970_v17 = vpop.f32.mrf.mxu3  ;;  %v924_v20 = vpop.f32.mrf.mxu2 }
 0x17b   :  { %1072 = vst [vmem:[#allocation10 + $0x50] sm:$0xff] %v1040_v15  ;;  %v971_v19 = vadd.f32 %v970_v17, %v922_v16  ;;  %v925_v28 = vadd.f32 %v924_v20, %v1668_v14 }
 0x17c   :  { %v875_v21 = vpop.f32.mrf.mxu1  ;;  %v828_v24 = vpop.f32.mrf.mxu0 }
 0x17d   :  { %v1009_v22 = vmul.f32 0.2, %v971_v19  ;;  %v876_v23 = vadd.f32 %v875_v21, %v827_v18  ;;  %v829_v30 = vadd.f32 %v828_v24, %v1665_v10 }
 0x17f   :  { %v1041_v25 = vmax.f32 %v971_v19, %v1009_v22  ;;  %v1010_v26 = vmul.f32 0.2, %v876_v23 }
 0x181   :  { %1073 = vst [vmem:[#allocation10 + $0x58] sm:$0xff] %v1041_v25  ;;  %v1042_v27 = vmax.f32 %v876_v23, %v1010_v26 }
 0x182   :  { %v973_v29 = vpop.f32.mrf.mxu3  ;;  %v926_v32 = vpop.f32.mrf.mxu2 }
 0x183   :  { %1074 = vst [vmem:[#allocation10 + $0x60] sm:$0xff] %v1042_v27  ;;  %v974_v31 = vadd.f32 %v973_v29, %v925_v28  ;;  %v927_v40 = vadd.f32 %v926_v32, %v1668_v14 }
 0x184   :  { %v877_v33 = vpop.f32.mrf.mxu1  ;;  %v831_v36 = vpop.f32.mrf.mxu0 }
 0x185   :  { %v1011_v34 = vmul.f32 0.2, %v974_v31  ;;  %v878_v35 = vadd.f32 %v877_v33, %v829_v30  ;;  %v832_v42 = vadd.f32 %v831_v36, %v1665_v10 }
 0x187   :  { %v1043_v37 = vmax.f32 %v974_v31, %v1011_v34  ;;  %v1012_v38 = vmul.f32 0.2, %v878_v35 }
 0x189   :  { %1075 = vst [vmem:[#allocation10 + $0x68] sm:$0xff] %v1043_v37  ;;  %v1044_v39 = vmax.f32 %v878_v35, %v1012_v38 }
 0x18a   :  { %v975_v41 = vpop.f32.mrf.mxu3  ;;  %v929_v44 = vpop.f32.mrf.mxu2 }
 0x18b   :  { %1076 = vst [vmem:[#allocation10 + $0x70] sm:$0xff] %v1044_v39  ;;  %v976_v43 = vadd.f32 %v975_v41, %v927_v40  ;;  %v930_v54 = vadd.f32 %v929_v44, %v1668_v14 }
 0x18c   :  { %v880_v45 = vpop.f32.mrf.mxu1  ;;  %v833_v48 = vpop.f32.mrf.mxu0 }
 0x18d   :  { %v1013_v46 = vmul.f32 0.2, %v976_v43  ;;  %v881_v47 = vadd.f32 %v880_v45, %v832_v42  ;;  %v834_v56 = vadd.f32 %v833_v48, %v1665_v10 }
 0x18f   :  { %v1045_v50 = vmax.f32 %v976_v43, %v1013_v46  ;;  %v1014_v51 = vmul.f32 0.2, %v881_v47 }
 0x191   :  { %1077 = vst [vmem:[#allocation10 + $0x78] sm:$0xff] %v1045_v50  ;;  %v1046_v52 = vmax.f32 %v881_v47, %v1014_v51 }
 0x192   :  { %v978_v55 = vpop.f32.mrf.mxu3  ;;  %v931_v58 = vpop.f32.mrf.mxu2 }
 0x193   :  { %1078 = vst [vmem:[#allocation10 + $0x80] sm:$0xff] %v1046_v52  ;;  %v979_v57 = vadd.f32 %v978_v55, %v930_v54  ;;  %v932_v2 = vadd.f32 %v931_v58, %v1668_v14 }
 0x194   :  { %v882_v59 = vpop.f32.mrf.mxu1  ;;  %v836_v62 = vpop.f32.mrf.mxu0 }
 0x195   :  { %v1015_v60 = vmul.f32 0.2, %v979_v57  ;;  %v883_v61 = vadd.f32 %v882_v59, %v834_v56  ;;  %v837_v4 = vadd.f32 %v836_v62, %v1665_v10 }
 0x197   :  { %v1047_v63 = vmax.f32 %v979_v57, %v1015_v60  ;;  %v1016_v0 = vmul.f32 0.2, %v883_v61 }
 0x199   :  { %1079 = vst [vmem:[#allocation10 + $0x88] sm:$0xff] %v1047_v63  ;;  %v1048_v1 = vmax.f32 %v883_v61, %v1016_v0 }
 0x19a   :  { %v980_v3 = vpop.f32.mrf.mxu3  ;;  %v934_v5 = vpop.f32.mrf.mxu2 }
 0x19b   :  { %1080 = vst [vmem:[#allocation10 + $0x90] sm:$0xff] %v1048_v1  ;;  %v981_v49 = vadd.f32 %v980_v3, %v932_v2  ;;  %v935_v13 = vadd.f32 %v934_v5, %v1668_v14 }
 0x19c   :  { %v885_v6 = vpop.f32.mrf.mxu1  ;;  %v838_v9 = vpop.f32.mrf.mxu0 }
 0x19d   :  { %v1017_v7 = vmul.f32 0.2, %v981_v49  ;;  %v886_v8 = vadd.f32 %v885_v6, %v837_v4  ;;  %v839_v16 = vadd.f32 %v838_v9, %v1665_v10 }
 0x19f   :  { %v1049_v53 = vmax.f32 %v981_v49, %v1017_v7  ;;  %v1018_v11 = vmul.f32 0.2, %v886_v8 }
 0x1a1   :  { %1081 = vst [vmem:[#allocation10 + $0x98] sm:$0xff] %v1049_v53  ;;  %v1050_v12 = vmax.f32 %v886_v8, %v1018_v11 }
 0x1a2   :  { %v983_v15 = vpop.f32.mrf.mxu3  ;;  %v936_v18 = vpop.f32.mrf.mxu2 }
 0x1a3   :  { %1082 = vst [vmem:[#allocation10 + $0xa0] sm:$0xff] %v1050_v12  ;;  %v984_v17 = vadd.f32 %v983_v15, %v935_v13  ;;  %v937_v26 = vadd.f32 %v936_v18, %v1668_v14 }
 0x1a4   :  { %v887_v19 = vpop.f32.mrf.mxu1  ;;  %v841_v22 = vpop.f32.mrf.mxu0 }
 0x1a5   :  { %v1019_v20 = vmul.f32 0.2, %v984_v17  ;;  %v888_v21 = vadd.f32 %v887_v19, %v839_v16  ;;  %v842_v28 = vadd.f32 %v841_v22, %v1665_v10 }
 0x1a7   :  { %v1051_v23 = vmax.f32 %v984_v17, %v1019_v20  ;;  %v1020_v24 = vmul.f32 0.2, %v888_v21 }
 0x1a9   :  { %1083 = vst [vmem:[#allocation10 + $0xa8] sm:$0xff] %v1051_v23  ;;  %v1052_v25 = vmax.f32 %v888_v21, %v1020_v24 }
 0x1aa   :  { %v985_v27 = vpop.f32.mrf.mxu3  ;;  %v939_v30 = vpop.f32.mrf.mxu2 }
 0x1ab   :  { %1084 = vst [vmem:[#allocation10 + $0xb0] sm:$0xff] %v1052_v25  ;;  %v986_v29 = vadd.f32 %v985_v27, %v937_v26  ;;  %v940_v38 = vadd.f32 %v939_v30, %v1668_v14 }
 0x1ac   :  { %v890_v31 = vpop.f32.mrf.mxu1  ;;  %v843_v34 = vpop.f32.mrf.mxu0 }
 0x1ad   :  { %v1021_v32 = vmul.f32 0.2, %v986_v29  ;;  %v891_v33 = vadd.f32 %v890_v31, %v842_v28  ;;  %v844_v40 = vadd.f32 %v843_v34, %v1665_v10 }
 0x1af   :  { %v1053_v35 = vmax.f32 %v986_v29, %v1021_v32  ;;  %v1022_v36 = vmul.f32 0.2, %v891_v33 }
 0x1b1   :  { %1085 = vst [vmem:[#allocation10 + $0xb8] sm:$0xff] %v1053_v35  ;;  %v1054_v37 = vmax.f32 %v891_v33, %v1022_v36 }
 0x1b2   :  { %v988_v39 = vpop.f32.mrf.mxu3  ;;  %v941_v42 = vpop.f32.mrf.mxu2 }
 0x1b3   :  { %1086 = vst [vmem:[#allocation10 + $0xc0] sm:$0xff] %v1054_v37  ;;  %v989_v41 = vadd.f32 %v988_v39, %v940_v38  ;;  %v942_v51 = vadd.f32 %v941_v42, %v1668_v14 }
 0x1b4   :  { %v892_v43 = vpop.f32.mrf.mxu1  ;;  %v846_v46 = vpop.f32.mrf.mxu0 }
 0x1b5   :  { %v1023_v44 = vmul.f32 0.2, %v989_v41  ;;  %v893_v45 = vadd.f32 %v892_v43, %v844_v40  ;;  %v847_v54 = vadd.f32 %v846_v46, %v1665_v10 }
 0x1b7   :  { %v1055_v47 = vmax.f32 %v989_v41, %v1023_v44  ;;  %v1024_v48 = vmul.f32 0.2, %v893_v45 }
 0x1b9   :  { %1087 = vst [vmem:[#allocation10 + $0xc8] sm:$0xff] %v1055_v47  ;;  %v1056_v50 = vmax.f32 %v893_v45, %v1024_v48 }
 0x1ba   :  { %v990_v52 = vpop.f32.mrf.mxu3  ;;  %v944_v57 = vpop.f32.mrf.mxu2 }
 0x1bb   :  { %1088 = vst [vmem:[#allocation10 + $0xd0] sm:$0xff] %v1056_v50  ;;  %v991_v55 = vadd.f32 %v990_v52, %v942_v51  ;;  %v945_v0 = vadd.f32 %v944_v57, %v1668_v14 }
 0x1bc   :  { %v895_v56 = vpop.f32.mrf.mxu1  ;;  %v848_v62 = vpop.f32.mrf.mxu0 }
 0x1bd   :  { %v1025_v58 = vmul.f32 0.2, %v991_v55  ;;  %v896_v59 = vadd.f32 %v895_v56, %v847_v54  ;;  %v849_v2 = vadd.f32 %v848_v62, %v1665_v10 }
 0x1bf   :  { %v1057_v60 = vmax.f32 %v991_v55, %v1025_v58  ;;  %v1026_v61 = vmul.f32 0.2, %v896_v59 }
 0x1c1   :  { %1089 = vst [vmem:[#allocation10 + $0xd8] sm:$0xff] %v1057_v60  ;;  %v1058_v63 = vmax.f32 %v896_v59, %v1026_v61 }
 0x1c2   :  { %v993_v1 = vpop.f32.mrf.mxu3  ;;  %v946_v6 = vpop.f32.mrf.mxu2 }
 0x1c3   :  { %1090 = vst [vmem:[#allocation10 + $0xe0] sm:$0xff] %v1058_v63  ;;  %v994_v3 = vadd.f32 %v993_v1, %v945_v0  ;;  %v947_v53 = vadd.f32 %v946_v6, %v1668_v14 }
 0x1c4   :  { %v897_v4 = vpop.f32.mrf.mxu1 }
 0x1c5   :  { %v1027_v49 = vmul.f32 0.2, %v994_v3  ;;  %v898_v5 = vadd.f32 %v897_v4, %v849_v2 }
 0x1c7   :  { %v1059_v7 = vmax.f32 %v994_v3, %v1027_v49  ;;  %v1028_v8 = vmul.f32 0.2, %v898_v5 }
 0x1c9   :  { %1091 = vst [vmem:[#allocation10 + $0xe8] sm:$0xff] %v1059_v7  ;;  %v1060_v9 = vmax.f32 %v898_v5, %v1028_v8 }
 0x1ca   :  { %v995_v11 = vpop.f32.mrf.mxu3 }
 0x1cb   :  { %1092 = vst [vmem:[#allocation10 + $0xf0] sm:$0xff] %v1060_v9  ;;  %v996_v12 = vadd.f32 %v995_v11, %v947_v53 }
 0x1cd   :  { %v1029_v13 = vmul.f32 0.2, %v996_v12 }
 0x1cf   :  { %v1061_v15 = vmax.f32 %v996_v12, %v1029_v13 }
 0x1d1   :  { %1093 = vst [vmem:[#allocation10 + $0xf8] sm:$0xff] %v1061_v15 }
 0x1d2   :  { %1097 = vsyncadd [#allocation4], 2048  ;;  %s1100_s16 = sshll.u32 %s1712_s5, 4  ;;  %s1580_s17 = smov [#allocation10]   ;;  %s1101_s16 = int_to_ptr.hbm [resolvable:$true] %s1100_s16 }
 0x1d3   :  { %s1098_s18 = sshll.u32 %s1580_s17, 4  ;;  %s1099_s18 = int_to_ptr.vmem [resolvable:$true] %s1098_s18 }
 0x1d4   :  { %1106 = dma.vmem_to_hbm [thread:$0]  %s1099_s18, 2048, %s1101_s16, [#allocation4], %s1576_s30, %s1576_s30, %s1577_s6  }
 0x1d5   :  { %1570 = dma.done.wait [#allocation4], 4096  }
 0x1d6   :  { %1571 = vsyncadd [#allocation4], 4294963200 }
 0x1d7   :  { %1111 = vsyncpa [#allocation3], 1 }
 0x1d8   :  { %1112 = vsyncpa [#allocation6], 1 }
 0x1d9   :  { %1113 = vsyncpa [#allocation9], 1 }
 0x1da   :  { %1114 = vsyncpa [#allocation4], 1 }

</bundles_post_ra>
